<compile_context>
chip_gen: v5e
topology: v5e:2x2
jax: 0.10.0
libtpu: 0.0.40
codegen_flags: <defaults>
</compile_context>

<pallas_src>
import functools

import jax
import jax.numpy as jnp
from jax.experimental import pallas as pl
from jax.experimental.pallas import tpu as pltpu


# ---------------------------------------------------------------------------
# one-shot weight standardization prep kernel
#   mean/var per output channel over (kh, kw, Cin); unbiased=False; eps=1e-5
# ---------------------------------------------------------------------------
def _ws_prep_kernel(w_ref, o_ref):
    w = w_ref[...].astype(jnp.float32)                       # (9*Cin, Cout)
    mean = jnp.mean(w, axis=0, keepdims=True)
    var = jnp.mean((w - mean) ** 2, axis=0, keepdims=True)
    o_ref[...] = (w - mean) * jax.lax.rsqrt(var + 1e-5)


def weight_standardize(w_flat):
    return pl.pallas_call(
        _ws_prep_kernel,
        out_shape=jax.ShapeDtypeStruct(w_flat.shape, jnp.float32),
    )(w_flat)


# ---------------------------------------------------------------------------
# fused Block kernel: conv3x3(pad=1) -> GroupNorm -> scale/shift -> SiLU
# one grid step per batch element
# ---------------------------------------------------------------------------
def _block_kernel(x_ref, wn_ref, b_ref, gamma_ref, beta_ref, oh_ref, oht_ref,
                  sc_ref, sh_ref, out_ref, slab_ref, *, groups):
    H, W, Cin = x_ref.shape[1], x_ref.shape[2], x_ref.shape[3]
    Cout = wn_ref.shape[2]
    Cg = Cout // groups
    K = 3 * Cin                                               # contraction per ky

    x = x_ref[0].astype(jnp.float32)                          # (H, W, Cin)

    # ---- zero only the halo regions (never overwritten below) --------------
    zrow = jnp.zeros((1, W, 3 * Cin), jnp.float32)
    zcol = jnp.zeros((H, 1, Cin), jnp.float32)
    slab_ref[pl.ds(0, 1), :, :] = zrow                        # top halo row
    slab_ref[pl.ds(H + 1, 1), :, :] = zrow                    # bottom halo row
    slab_ref[pl.ds(1, H), pl.ds(0, 1), pl.ds(0, Cin)] = zcol          # left halo
    slab_ref[pl.ds(1, H), pl.ds(W - 1, 1), pl.ds(2 * Cin, Cin)] = zcol  # right halo

    # ---- im2col along W:  slab[py, xo, kx*Cin + c] = xpad[py, xo + kx, c] ---
    slab_ref[pl.ds(1, H), pl.ds(1, W - 1), pl.ds(0, Cin)] = x[:, 0:W - 1, :]
    slab_ref[pl.ds(1, H), :, pl.ds(Cin, Cin)] = x
    slab_ref[pl.ds(1, H), pl.ds(0, W - 1), pl.ds(2 * Cin, Cin)] = x[:, 1:W, :]

    # ---- 3x3 conv as 3 matmuls with K = 3*Cin (bias NOT added here) --------
    acc = jnp.zeros((H * W, Cout), jnp.float32)
    for ky in range(3):
        slab = slab_ref[pl.ds(ky, H), :, :].reshape(H * W, K)
        acc = acc + jnp.dot(slab, wn_ref[ky],
                            preferred_element_type=jnp.float32)

    # ---- GroupNorm (single-pass stats); conv bias folded analytically ------
    n_pix = float(H * W)
    cnt = n_pix * Cg
    bias = b_ref[...]                                         # (1, Cout)
    s0 = jnp.sum(acc, axis=0, keepdims=True)                  # sum(acc)
    q0 = jnp.sum(acc * acc, axis=0, keepdims=True)            # sum(acc^2)
    s = s0 + n_pix * bias                                     # sum(acc + bias)
    q = q0 + 2.0 * bias * s0 + n_pix * bias * bias            # sum((acc+bias)^2)

    g_mean = jnp.dot(s, oh_ref[...], preferred_element_type=jnp.float32) / cnt
    g_msq = jnp.dot(q, oh_ref[...], preferred_element_type=jnp.float32) / cnt
    g_inv = jax.lax.rsqrt(g_msq - g_mean * g_mean + 1e-5)     # (1, G)
    mean_c = jnp.dot(g_mean, oht_ref[...], preferred_element_type=jnp.float32)
    inv_c = jnp.dot(g_inv, oht_ref[...], preferred_element_type=jnp.float32)

    gamma = gamma_ref[...]
    beta = beta_ref[...]
    scale1 = sc_ref[0] + 1.0                                  # (1, Cout)
    shift = sh_ref[0]                                         # (1, Cout)

    # y = ((acc + bias - mean) * inv * gamma + beta) * (scale + 1) + shift
    g_eff = inv_c * gamma * scale1
    b_eff = ((bias - mean_c) * inv_c * gamma + beta) * scale1 + shift

    y = acc * g_eff + b_eff
    y = y * jax.nn.sigmoid(y)                                 # SiLU
    out_ref[0] = y.reshape(H, W, Cout).astype(out_ref.dtype)


def block_forward(x, conv_w_flat, conv_b, gn_gamma, gn_beta, *, groups=8,
                  scale_shift=None):
    """Block.forward(x, scale_shift).  x is NHWC; scale/shift are (B, Cout)."""
    B, H, W, Cin = x.shape
    Cout = conv_w_flat.shape[1]

    wn = weight_standardize(conv_w_flat).reshape(3, 3 * Cin, Cout)  # hoisted

    if scale_shift is None:
        scale = jnp.zeros((B, 1, Cout), jnp.float32)          # identity: *(0+1)+0
        shift = jnp.zeros((B, 1, Cout), jnp.float32)
    else:
        sc, sh = scale_shift
        scale = sc.reshape(B, 1, Cout).astype(jnp.float32)
        shift = sh.reshape(B, 1, Cout).astype(jnp.float32)

    cg = Cout // groups
    onehot = (jnp.arange(Cout)[:, None] // cg
              == jnp.arange(groups)[None, :]).astype(jnp.float32)   # (Cout, G)
    onehot_t = onehot.T                                               # (G, Cout)

    kernel = functools.partial(_block_kernel, groups=groups)
    return pl.pallas_call(
        kernel,
        out_shape=jax.ShapeDtypeStruct((B, H, W, Cout), jnp.float32),
        grid_spec=pltpu.PrefetchScalarGridSpec(
            num_scalar_prefetch=0,
            grid=(B,),
            in_specs=[
                pl.BlockSpec((1, H, W, Cin), lambda b: (b, 0, 0, 0)),
                pl.BlockSpec((3, 3 * Cin, Cout), lambda b: (0, 0, 0)),
                pl.BlockSpec((1, Cout), lambda b: (0, 0)),
                pl.BlockSpec((1, Cout), lambda b: (0, 0)),
                pl.BlockSpec((1, Cout), lambda b: (0, 0)),
                pl.BlockSpec((Cout, groups), lambda b: (0, 0)),
                pl.BlockSpec((groups, Cout), lambda b: (0, 0)),
                pl.BlockSpec((1, 1, Cout), lambda b: (b, 0, 0)),
                pl.BlockSpec((1, 1, Cout), lambda b: (b, 0, 0)),
            ],
            out_specs=pl.BlockSpec((1, H, W, Cout), lambda b: (b, 0, 0, 0)),
            scratch_shapes=[pltpu.VMEM((H + 2, W, 3 * Cin), jnp.float32)],
        ),
        compiler_params=pltpu.CompilerParams(
            dimension_semantics=("parallel",)),
    )(x, wn, conv_b.reshape(1, Cout), gn_gamma.reshape(1, Cout),
      gn_beta.reshape(1, Cout), onehot, onehot_t, scale, shift)


# ---------------------------------------------------------------------------
# pure-JAX reference for verification
# ---------------------------------------------------------------------------
def _ws_conv_ref(x, w_flat, b):
    Cin = x.shape[-1]
    Cout = w_flat.shape[1]
    w = w_flat.reshape(3, 3, Cin, Cout)
    mean = jnp.mean(w, axis=(0, 1, 2), keepdims=True)
    var = jnp.mean((w - mean) ** 2, axis=(0, 1, 2), keepdims=True)
    wn = (w - mean) * jax.lax.rsqrt(var + 1e-5)
    y = jax.lax.conv_general_dilated(
        x, wn, (1, 1), "SAME", dimension_numbers=("NHWC", "HWIO", "NHWC"),
        precision=jax.lax.Precision.HIGHEST)
    return y + b


def _group_norm_ref(x, gamma, beta, groups):
    B, H, W, C = x.shape
    xg = x.reshape(B, H, W, groups, C // groups)
    m = jnp.mean(xg, axis=(1, 2, 4), keepdims=True)
    v = jnp.mean((xg - m) ** 2, axis=(1, 2, 4), keepdims=True)
    xn = (xg - m) * jax.lax.rsqrt(v + 1e-5)
    return xn.reshape(B, H, W, C) * gamma + beta


def block_reference(x, w_flat, b, gamma, beta, *, groups=8, scale_shift=None):
    h = _ws_conv_ref(x, w_flat, b)
    h = _group_norm_ref(h, gamma, beta, groups)
    if scale_shift is not None:
        scale, shift = scale_shift
        h = h * (scale[:, None, None, :] + 1.0) + shift[:, None, None, :]
    return jax.nn.silu(h)


if __name__ == "__main__":
    B, H, W = 2, 16, 16
    dim, dim_out, groups = 8, 16, 8

    key = jax.random.PRNGKey(0)
    keys = jax.random.split(key, 7)
    x = jax.random.normal(keys[0], (B, H, W, dim), jnp.float32)
    conv_w = 0.2 * jax.random.normal(keys[1], (9 * dim, dim_out), jnp.float32)
    conv_b = 0.05 * jax.random.normal(keys[2], (dim_out,), jnp.float32)
    gn_g = 1.0 + 0.1 * jax.random.normal(keys[3], (dim_out,), jnp.float32)
    gn_b = 0.1 * jax.random.normal(keys[4], (dim_out,), jnp.float32)
    scale = 0.3 * jax.random.normal(keys[5], (B, dim_out), jnp.float32)
    shift = 0.3 * jax.random.normal(keys[6], (B, dim_out), jnp.float32)

    # path with time-embedding scale/shift
    out = block_forward(x, conv_w, conv_b, gn_g, gn_b, groups=groups,
                        scale_shift=(scale, shift))
    out = jax.block_until_ready(out)
    ref = block_reference(x, conv_w, conv_b, gn_g, gn_b, groups=groups,
                          scale_shift=(scale, shift))
    err1 = float(jnp.max(jnp.abs(out - ref)))
    assert out.shape == (B, H, W, dim_out), out.shape
    assert err1 < 2e-3, err1

    # path without scale_shift (identity)
    out2 = jax.block_until_ready(
        block_forward(x, conv_w, conv_b, gn_g, gn_b, groups=groups))
    ref2 = block_reference(x, conv_w, conv_b, gn_g, gn_b, groups=groups)
    err2 = float(jnp.max(jnp.abs(out2 - ref2)))
    assert err2 < 2e-3, err2

    print("KERNEL_OK")
</pallas_src>

<mosaic_0001>
module attributes {stable_mosaic.version = 11 : i64} {
  func.func @_ws_prep_kernel(%arg0: memref<72x16xf32, #tpu.memory_space<vmem>>, %arg1: memref<72x16xf32, #tpu.memory_space<vmem>>) attributes {dimension_semantics = [], scalar_prefetch = 0 : i64, scratch_operands = 0 : i64, tpu.core_type = #tpu.core_type<tc>} {
    %c0 = arith.constant 0 : index
    %c0_0 = arith.constant 0 : index
    %0 = vector.load %arg0[%c0, %c0_0] : memref<72x16xf32, #tpu.memory_space<vmem>>, vector<72x16xf32>
    %cst = arith.constant dense<0.000000e+00> : vector<16xf32>
    %1 = vector.multi_reduction <add>, %0, %cst [0] : vector<72x16xf32> to vector<16xf32>
    %2 = vector.shape_cast %1 : vector<16xf32> to vector<1x16xf32>
    %cst_1 = arith.constant 7.200000e+01 : f32
    %3 = vector.broadcast %cst_1 : f32 to vector<1x16xf32>
    %4 = arith.divf %2, %3 : vector<1x16xf32>
    %5 = vector.broadcast %4 : vector<1x16xf32> to vector<72x16xf32>
    %6 = arith.subf %0, %5 : vector<72x16xf32>
    %7 = arith.mulf %6, %6 : vector<72x16xf32>
    %cst_2 = arith.constant dense<0.000000e+00> : vector<16xf32>
    %8 = vector.multi_reduction <add>, %7, %cst_2 [0] : vector<72x16xf32> to vector<16xf32>
    %9 = vector.shape_cast %8 : vector<16xf32> to vector<1x16xf32>
    %cst_3 = arith.constant 7.200000e+01 : f32
    %10 = vector.broadcast %cst_3 : f32 to vector<1x16xf32>
    %11 = arith.divf %9, %10 : vector<1x16xf32>
    %12 = vector.broadcast %4 : vector<1x16xf32> to vector<72x16xf32>
    %13 = arith.subf %0, %12 : vector<72x16xf32>
    %cst_4 = arith.constant 9.99999974E-6 : f32
    %14 = vector.broadcast %cst_4 : f32 to vector<1x16xf32>
    %15 = arith.addf %11, %14 : vector<1x16xf32>
    %16 = math.rsqrt %15 : vector<1x16xf32>
    %17 = vector.broadcast %16 : vector<1x16xf32> to vector<72x16xf32>
    %18 = arith.mulf %13, %17 : vector<72x16xf32>
    %c0_5 = arith.constant 0 : index
    %c0_6 = arith.constant 0 : index
    %19 = vector.load %arg1[%c0_5, %c0_6] : memref<72x16xf32, #tpu.memory_space<vmem>>, vector<72x16xf32>
    tpu.vector_store %arg1[%c0_5, %c0_6], %18 {strides = array<i32>} : memref<72x16xf32, #tpu.memory_space<vmem>>, vector<72x16xf32>,
    return
  }
}

</mosaic_0001>

<bundles_post_ra>
// kernel: tpu_custom_call.1
= control target key start
LH: loop header
LB: loop body
LE: loop exit
PB: predicated region body
PF: predicated region fallthrough
CT: control target
= control target key end

     0   :  { %vm17_vm0 = vcmask 130048   ;;  %v129_v9 = vmov 72.0   ;;  %s221_s0 = inlined_call_operand.vmem [shape: f32[72,16], index: 0, kind: input, shape index: {}]   ;;  %s222_s1 = inlined_call_operand.vmem [shape: f32[72,16], index: 1, kind: output, shape index: {}]  }
   0x1   :  { %v8_v0 = vld [vmem:[%s221_s0] sm:$0xff]  ;;  %v9_v1 = vld [vmem:[%s221_s0 + $0x8] sm:$0xff]  ;;  %v10_v2 = vld [vmem:[%s221_s0 + $0x10] sm:$0xff]  ;;  %125 = vrcp.f32 %v129_v9 }
   0x2   :  { %v11_v3 = vld [vmem:[%s221_s0 + $0x18] sm:$0xff]  ;;  %v18_v4 = vsel %vm17_vm0, %v8_v0, 0.0  ;;  %v19_v5 = vsel %vm17_vm0, %v9_v1, 0.0  ;;  %v21_v6 = vsel %vm17_vm0, %v10_v2, 0.0  ;;  %v12_v7 = vld [vmem:[%s221_s0 + $0x20] sm:$0xff]  ;;  %v13_v11 = vld [vmem:[%s221_s0 + $0x28] sm:$0xff] }
   0x3   :  { %v20_v8 = vadd.f32 %v19_v5, %v18_v4  ;;  %v23_v10 = vsel %vm17_vm0, %v11_v3, 0.0  ;;  %v25_v13 = vsel %vm17_vm0, %v12_v7, 0.0  ;;  %v14_v14 = vld [vmem:[%s221_s0 + $0x30] sm:$0xff]  ;;  %v27_v16 = vsel %vm17_vm0, %v13_v11, 0.0  ;;  %v15_v18 = vld [vmem:[%s221_s0 + $0x38] sm:$0xff]  ;;  %v16_v21 = vld [vmem:[%s221_s0 + $0x40] sm:$0xff] }
   0x4   :  { %v29_v20 = vsel %vm17_vm0, %v14_v14, 0.0  ;;  %v31_v23 = vsel %vm17_vm0, %v15_v18, 0.0  ;;  %v33_v26 = vsel %vm17_vm0, %v16_v21, 0.0 }
   0x5   :  { %v22_v12 = vadd.f32 %v21_v6, %v20_v8 }
   0x7   :  { %v24_v15 = vadd.f32 %v23_v10, %v22_v12  ;;  %v126_v17 = vpop.eup %125 }
   0x8   :  { %v42_v24 = vmul.f32 72.0, %v126_v17  ;;  %vm46_vm1 = vweird.f32 %v126_v17 }
   0x9   :  { %v26_v19 = vadd.f32 %v25_v13, %v24_v15 }
   0xa   :  { %v43_v28 = vsub.f32 1.0, %v42_v24 }
   0xb   :  { %v28_v22 = vadd.f32 %v27_v16, %v26_v19 }
   0xc   :  { %v44_v31 = vmul.f32 %v126_v17, %v43_v28 }
   0xd   :  { %v30_v25 = vadd.f32 %v29_v20, %v28_v22 }
   0xe   :  { %v45_v34 = vadd.f32 %v126_v17, %v44_v31 }
   0xf   :  { %v32_v27 = vadd.f32 %v31_v23, %v30_v25 }
  0x10   :  { %v47_v37 = vsel %vm46_vm1, %v126_v17, %v45_v34 }
  0x11   :  { %v34_v29 = vadd.f32 %v33_v26, %v32_v27 }
  0x13   :  { %v35_v30 = vrot.slane %v34_v29, 4 }
  0x15   :  { %v36_v32 = vadd.f32 %v35_v30, %v34_v29 }
  0x17   :  { %v37_v33 = vrot.slane %v36_v32, 2 }
  0x19   :  { %v38_v35 = vadd.f32 %v37_v33, %v36_v32 }
  0x1b   :  { %v39_v36 = vrot.slane %v38_v35, 1 }
  0x1d   :  { %v40_v38 = vadd.f32 %v39_v36, %v38_v35 }
  0x1f   :  { %v48_v39 = vmul.f32 %v47_v37, %v40_v38 }
  0x21   :  { %v49_v40 = vsub.f32 %v8_v0, %v48_v39  ;;  %v50_v41 = vsub.f32 %v9_v1, %v48_v39  ;;  %v51_v42 = vsub.f32 %v10_v2, %v48_v39  ;;  %v52_v43 = vsub.f32 %v11_v3, %v48_v39 }
  0x22   :  { %v53_v44 = vsub.f32 %v12_v7, %v48_v39  ;;  %v54_v45 = vsub.f32 %v13_v11, %v48_v39  ;;  %v55_v50 = vsub.f32 %v14_v14, %v48_v39  ;;  %v56_v56 = vsub.f32 %v15_v18, %v48_v39 }
  0x23   :  { %v58_v46 = vmul.f32 %v49_v40, %v49_v40  ;;  %v59_v47 = vmul.f32 %v50_v41, %v50_v41  ;;  %v60_v48 = vmul.f32 %v51_v42, %v51_v42  ;;  %v61_v49 = vmul.f32 %v52_v43, %v52_v43 }
  0x24   :  { %v62_v51 = vmul.f32 %v53_v44, %v53_v44  ;;  %v63_v57 = vmul.f32 %v54_v45, %v54_v45  ;;  %v57_v60 = vsub.f32 %v16_v21, %v48_v39  ;;  %v64_v61 = vmul.f32 %v55_v50, %v55_v50 }
  0x25   :  { %v67_v52 = vsel %vm17_vm0, %v58_v46, 0.0  ;;  %v68_v53 = vsel %vm17_vm0, %v59_v47, 0.0  ;;  %v70_v55 = vsel %vm17_vm0, %v60_v48, 0.0  ;;  %v72_v58 = vsel %vm17_vm0, %v61_v49, 0.0 }
  0x26   :  { %v69_v54 = vadd.f32 %v68_v53, %v67_v52  ;;  %v74_v62 = vsel %vm17_vm0, %v62_v51, 0.0  ;;  %v65_v0 = vmul.f32 %v56_v56, %v56_v56  ;;  %v76_v1 = vsel %vm17_vm0, %v63_v57, 0.0 }
  0x27   :  { %v66_v3 = vmul.f32 %v57_v60, %v57_v60  ;;  %v78_v4 = vsel %vm17_vm0, %v64_v61, 0.0 }
  0x28   :  { %v71_v59 = vadd.f32 %v70_v55, %v69_v54  ;;  %v80_v6 = vsel %vm17_vm0, %v65_v0, 0.0 }
  0x29   :  { %v82_v8 = vsel %vm17_vm0, %v66_v3, 0.0 }
  0x2a   :  { %v73_v63 = vadd.f32 %v72_v58, %v71_v59 }
  0x2c   :  { %v75_v2 = vadd.f32 %v74_v62, %v73_v63 }
  0x2e   :  { %v77_v5 = vadd.f32 %v76_v1, %v75_v2 }
  0x30   :  { %v79_v7 = vadd.f32 %v78_v4, %v77_v5 }
  0x32   :  { %v81_v9 = vadd.f32 %v80_v6, %v79_v7 }
  0x34   :  { %v83_v10 = vadd.f32 %v82_v8, %v81_v9 }
  0x36   :  { %v84_v11 = vrot.slane %v83_v10, 4 }
  0x38   :  { %v85_v12 = vadd.f32 %v84_v11, %v83_v10 }
  0x3a   :  { %v86_v13 = vrot.slane %v85_v12, 2 }
  0x3c   :  { %v87_v14 = vadd.f32 %v86_v13, %v85_v12 }
  0x3e   :  { %v88_v15 = vrot.slane %v87_v14, 1 }
  0x40   :  { %v89_v16 = vadd.f32 %v88_v15, %v87_v14 }
  0x42   :  { %v90_v17 = vmul.f32 %v89_v16, %v47_v37 }
  0x44   :  { %v91_v18 = vadd.f32 1e-05, %v90_v17 }
  0x46   :  { %127 = vrsqrt.f32 %v91_v18  ;;  %vm98_vm2 = vweird.f32 %v91_v18 }
  0x4c   :  { %v128_v19 = vpop.eup %127 }
  0x4d   :  { %v93_v20 = vmul.f32 %v128_v19, %v91_v18  ;;  %vm99_vm3 = vweird.f32 %v128_v19 }
  0x4e   :  { %vm100_vm4 = vmor %vm98_vm2, %vm99_vm3 }
  0x4f   :  { %v94_v21 = vmul.f32 %v128_v19, %v93_v20 }
  0x51   :  { %v95_v22 = vmul.f32 0.5, %v94_v21 }
  0x53   :  { %v96_v23 = vsub.f32 1.5, %v95_v22 }
  0x55   :  { %v97_v24 = vmul.f32 %v128_v19, %v96_v23 }
  0x57   :  { %v101_v25 = vsel %vm100_vm4, %v128_v19, %v97_v24 }
  0x58   :  { %v102_v26 = vmul.f32 %v101_v25, %v49_v40  ;;  %v103_v27 = vmul.f32 %v101_v25, %v50_v41  ;;  %v104_v28 = vmul.f32 %v101_v25, %v51_v42  ;;  %v105_v29 = vmul.f32 %v101_v25, %v52_v43 }
  0x59   :  { %v106_v30 = vmul.f32 %v101_v25, %v53_v44  ;;  %v107_v31 = vmul.f32 %v101_v25, %v54_v45  ;;  %v108_v32 = vmul.f32 %v101_v25, %v55_v50  ;;  %v109_v33 = vmul.f32 %v101_v25, %v56_v56 }
  0x5a   :  { %111 = vst.msk [vmem:[%s222_s1] sm:$0xff] %vm17_vm0, %v102_v26  ;;  %v110_v34 = vmul.f32 %v101_v25, %v57_v60 }
  0x5b   :  { %112 = vst.msk [vmem:[%s222_s1 + $0x8] sm:$0xff] %vm17_vm0, %v103_v27 }
  0x5c   :  { %113 = vst.msk [vmem:[%s222_s1 + $0x10] sm:$0xff] %vm17_vm0, %v104_v28 }
  0x5d   :  { %114 = vst.msk [vmem:[%s222_s1 + $0x18] sm:$0xff] %vm17_vm0, %v105_v29 }
  0x5e   :  { %115 = vst.msk [vmem:[%s222_s1 + $0x20] sm:$0xff] %vm17_vm0, %v106_v30 }
  0x5f   :  { %116 = vst.msk [vmem:[%s222_s1 + $0x28] sm:$0xff] %vm17_vm0, %v107_v31 }
  0x60   :  { %117 = vst.msk [vmem:[%s222_s1 + $0x30] sm:$0xff] %vm17_vm0, %v108_v32 }
  0x61   :  { %118 = vst.msk [vmem:[%s222_s1 + $0x38] sm:$0xff] %vm17_vm0, %v109_v33 }
  0x62   :  { %119 = vst.msk [vmem:[%s222_s1 + $0x40] sm:$0xff] %vm17_vm0, %v110_v34 }

</bundles_post_ra>
